<compile_context>
chip_gen: v7x
topology: tpu7x:2x2x1
jax: 0.10.0
libtpu: 0.0.40
codegen_flags: <defaults>
</compile_context>

<pallas_src>
import jax
import jax.numpy as jnp
from jax.experimental import pallas as pl
from jax.experimental.pallas import tpu as pltpu


def _mil_attention_kernel(xT_ref, w1T_ref, b1_ref, w2_ref, b2_ref, o_ref):
    # xT_ref:  (n_in, TM)       -- rows (instances) on lanes
    # w1T_ref: (n_latent, n_in)
    # b1_ref:  (n_latent, 1)
    # w2_ref:  (n_latent, 1)
    # b2_ref:  (1,) in SMEM
    # o_ref:   (1, TM)          -- lane-dense scores
    h = jnp.dot(w1T_ref[...], xT_ref[...],
                preferred_element_type=jnp.float32)          # (n_latent, TM)
    h = jnp.tanh(h + b1_ref[...].astype(jnp.float32))        # f32 VPU/EUP math

    # Second linear (n_latent -> 1): VPU fma + cross-sublane reduce (XLU),
    # avoiding an MXU matmul with output width 1.
    scores = jnp.sum(h * w2_ref[...].astype(jnp.float32),
                     axis=0, keepdims=True)                   # (1, TM)
    scores = scores + b2_ref[0].astype(jnp.float32)
    o_ref[...] = scores.astype(o_ref.dtype)


def mil_attention(x, w1, b1, w2, b2, *, row_tile=1024):
    """x: [B, N, n_in] -> [B, N, 1]  (same semantics as the torch module)."""
    assert row_tile >= 128 and row_tile % 128 == 0, "row_tile must be a multiple of 128"
    B, N, n_in = x.shape
    n_latent = w1.shape[1]
    M = B * N

    # Lane-dense tiling: pad the row axis up to a multiple of 128, cap the tile
    # at row_tile, and pad M so the tile divides it. Padded (zero) rows produce
    # garbage scores that are sliced off below -- no masking needed.
    m_pad128 = pl.cdiv(M, 128) * 128
    tm = min(row_tile, m_pad128)
    M_pad = pl.cdiv(m_pad128, tm) * tm
    grid = (M_pad // tm,)

    x2 = x.reshape(M, n_in)
    if M_pad != M:
        x2 = jnp.pad(x2, ((0, M_pad - M), (0, 0)))
    xT = x2.T                                    # (n_in, M_pad)

    w1T = w1.T                                   # (n_latent, n_in)
    b1_col = b1.reshape(n_latent, 1)
    w2_col = w2.reshape(n_latent, 1)
    b2_s = b2.reshape(1)

    out = pl.pallas_call(
        _mil_attention_kernel,
        out_shape=jax.ShapeDtypeStruct((1, M_pad), x.dtype),
        grid_spec=pltpu.PrefetchScalarGridSpec(
            num_scalar_prefetch=0,
            grid=grid,
            in_specs=[
                pl.BlockSpec((n_in, tm), lambda i: (0, i)),          # x^T row tile
                pl.BlockSpec((n_latent, n_in), lambda i: (0, 0)),    # W1^T (resident)
                pl.BlockSpec((n_latent, 1), lambda i: (0, 0)),       # b1 column
                pl.BlockSpec((n_latent, 1), lambda i: (0, 0)),       # w2 column
                pl.BlockSpec(memory_space=pltpu.MemorySpace.SMEM),   # b2 scalar
            ],
            out_specs=pl.BlockSpec((1, tm), lambda i: (0, i)),
        ),
        compiler_params=pltpu.CompilerParams(
            dimension_semantics=("parallel",),
        ),
    )(xT, w1T, b1_col, w2_col, b2_s)

    return out[0, :M].reshape(B, N, 1)


def init_mil_params(key, n_in, n_latent=None, dtype=jnp.float32):
    """Deterministic init matching PyTorch nn.Linear default (uniform +/- 1/sqrt(fan_in))."""
    n_latent = n_latent or (n_in + 1) // 2
    k1, k2, k3, k4 = jax.random.split(key, 4)
    bound1 = 1.0 / (n_in ** 0.5)
    bound2 = 1.0 / (n_latent ** 0.5)
    # Stored already transposed relative to torch (torch weight is [out, in]; we use [in, out]).
    w1 = jax.random.uniform(k1, (n_in, n_latent), dtype, -bound1, bound1)
    b1 = jax.random.uniform(k2, (n_latent,), dtype, -bound1, bound1)
    w2 = jax.random.uniform(k3, (n_latent, 1), dtype, -bound2, bound2)
    b2 = jax.random.uniform(k4, (1,), dtype, -bound2, bound2)
    return w1, b1, w2, b2, n_latent


if __name__ == "__main__":
    key = jax.random.PRNGKey(0)
    kx, kp = jax.random.split(key)

    B, N, n_in = 2, 8, 32          # 2 bags, 8 instances each, 32 features
    w1, b1, w2, b2, n_latent = init_mil_params(kp, n_in)

    x = jax.random.normal(kx, (B, N, n_in), dtype=jnp.float32)

    out = mil_attention(x, w1, b1, w2, b2)
    out = jax.block_until_ready(out)

    # Pure-JAX reference check (same math as the PyTorch forward).
    ref = jnp.tanh(x @ w1 + b1) @ w2 + b2
    assert out.shape == (B, N, 1), out.shape
    assert jnp.allclose(out, ref, atol=1e-5, rtol=1e-5), "mismatch vs reference"

    print("KERNEL_OK")
</pallas_src>

<mosaic_0001>
module attributes {stable_mosaic.version = 11 : i64} {
  func.func @_mil_attention_kernel(%arg0: i32, %arg1: memref<32x128xf32, #tpu.memory_space<vmem>>, %arg2: memref<16x32xf32, #tpu.memory_space<vmem>>, %arg3: memref<16x1xf32, #tpu.memory_space<vmem>>, %arg4: memref<16x1xf32, #tpu.memory_space<vmem>>, %arg5: memref<1xf32, #tpu.memory_space<smem>>, %arg6: memref<1x128xf32, #tpu.memory_space<vmem>>) attributes {dimension_semantics = [#tpu.dimension_semantics<parallel>], iteration_bounds = array<i64: 1>, scalar_prefetch = 0 : i64, scratch_operands = 0 : i64, tpu.core_type = #tpu.core_type<tc>, window_params = [{transform_indices = @transform_0, window_bounds = array<i64: 32, 128>}, {pipeline_mode = #tpu.pipeline_mode<synchronous>, transform_indices = @transform_1, window_bounds = array<i64: 16, 32>}, {pipeline_mode = #tpu.pipeline_mode<synchronous>, transform_indices = @transform_2, window_bounds = array<i64: 16, 1>}, {pipeline_mode = #tpu.pipeline_mode<synchronous>, transform_indices = @transform_3, window_bounds = array<i64: 16, 1>}, {transform_indices = @transform_4, window_bounds = array<i64: 1>}, {transform_indices = @transform_5, window_bounds = array<i64: 1, 128>}]} {
    %c0 = arith.constant 0 : index
    %c0_0 = arith.constant 0 : index
    %0 = vector.load %arg2[%c0, %c0_0] : memref<16x32xf32, #tpu.memory_space<vmem>>, vector<16x32xf32>
    %c0_1 = arith.constant 0 : index
    %c0_2 = arith.constant 0 : index
    %1 = vector.load %arg1[%c0_1, %c0_2] : memref<32x128xf32, #tpu.memory_space<vmem>>, vector<32x128xf32>
    %cst = arith.constant dense<0.000000e+00> : vector<16x128xf32>
    %2 = tpu.matmul %0, %1, %cst {dimension_numbers = #tpu.dot_dimension_numbers<[1], [0], [0], [1], [0, 0, 1, 1], [], []>} : vector<16x32xf32>, vector<32x128xf32>, vector<16x128xf32> -> vector<16x128xf32>
    %c0_3 = arith.constant 0 : index
    %c0_4 = arith.constant 0 : index
    %3 = vector.load %arg3[%c0_3, %c0_4] : memref<16x1xf32, #tpu.memory_space<vmem>>, vector<16x1xf32>
    %4 = vector.broadcast %3 : vector<16x1xf32> to vector<16x128xf32>
    %5 = arith.addf %2, %4 : vector<16x128xf32>
    %6 = math.tanh %5 : vector<16x128xf32>
    %c0_5 = arith.constant 0 : index
    %c0_6 = arith.constant 0 : index
    %7 = vector.load %arg4[%c0_5, %c0_6] : memref<16x1xf32, #tpu.memory_space<vmem>>, vector<16x1xf32>
    %8 = vector.broadcast %7 : vector<16x1xf32> to vector<16x128xf32>
    %9 = arith.mulf %6, %8 : vector<16x128xf32>
    %cst_7 = arith.constant dense<0.000000e+00> : vector<128xf32>
    %10 = vector.multi_reduction <add>, %9, %cst_7 [0] : vector<16x128xf32> to vector<128xf32>
    %11 = vector.shape_cast %10 : vector<128xf32> to vector<1x128xf32>
    %c0_8 = arith.constant 0 : index
    %12 = memref.load %arg5[%c0_8] : memref<1xf32, #tpu.memory_space<smem>>
    %13 = vector.broadcast %12 : f32 to vector<1x128xf32>
    %14 = arith.addf %11, %13 : vector<1x128xf32>
    %c0_9 = arith.constant 0 : index
    %c0_10 = arith.constant 0 : index
    %15 = vector.load %arg6[%c0_9, %c0_10] : memref<1x128xf32, #tpu.memory_space<vmem>>, vector<1x128xf32>
    tpu.vector_store %arg6[%c0_9, %c0_10], %14 {strides = array<i32>} : memref<1x128xf32, #tpu.memory_space<vmem>>, vector<1x128xf32>,
    return
  }
  func.func @transform_0(%arg0: i32) -> (i32, i32) {
    %c0_i32 = arith.constant 0 : i32
    %c0_i32_0 = arith.constant 0 : i32
    return %c0_i32, %arg0 : i32, i32
  }
  func.func @transform_1(%arg0: i32) -> (i32, i32) {
    %c0_i32 = arith.constant 0 : i32
    %c0_i32_0 = arith.constant 0 : i32
    %c0_i32_1 = arith.constant 0 : i32
    return %c0_i32, %c0_i32_0 : i32, i32
  }
  func.func @transform_2(%arg0: i32) -> (i32, i32) {
    %c0_i32 = arith.constant 0 : i32
    %c0_i32_0 = arith.constant 0 : i32
    %c0_i32_1 = arith.constant 0 : i32
    return %c0_i32, %c0_i32_0 : i32, i32
  }
  func.func @transform_3(%arg0: i32) -> (i32, i32) {
    %c0_i32 = arith.constant 0 : i32
    %c0_i32_0 = arith.constant 0 : i32
    %c0_i32_1 = arith.constant 0 : i32
    return %c0_i32, %c0_i32_0 : i32, i32
  }
  func.func @transform_4(%arg0: i32) -> i32 {
    %c0_i32 = arith.constant 0 : i32
    %c0_i32_0 = arith.constant 0 : i32
    return %c0_i32 : i32
  }
  func.func @transform_5(%arg0: i32) -> (i32, i32) {
    %c0_i32 = arith.constant 0 : i32
    %c0_i32_0 = arith.constant 0 : i32
    return %c0_i32, %arg0 : i32, i32
  }
}

</mosaic_0001>

<bundles_post_ra>
// kernel: tpu_custom_call.1
= control target key start
LH: loop header
LB: loop body
LE: loop exit
PB: predicated region body
PF: predicated region fallthrough
CT: control target
= control target key end

     0   :  { %11 = vsyncpa [#allocation4], 0  ;;  %s352_s0 = inlined_call_operand.vmem [shape: f32[32,128], index: 0, kind: input, shape index: {}]   ;;  %s353_s1 = inlined_call_operand.hbm [shape: f32[16,32], index: 1, kind: input, shape index: {}]   ;;  %s354_s2 = inlined_call_operand.vmem [shape: f32[16,1], index: 2, kind: input, shape index: {}]   ;;  %s355_s3 = inlined_call_operand.vmem [shape: f32[16,1], index: 3, kind: input, shape index: {}]   ;;  %s356_s4 = inlined_call_operand.<no memory space> [shape: f32[1], index: 4, kind: input, shape index: {}]   ;;  %s357_s5 = inlined_call_operand.hbm [shape: f32[1,128], index: 5, kind: output, shape index: {}]  }
   0x1   :  { %12 = vsyncpa [#allocation5], 0  ;;  %s264_s18 = smov [#allocation3]   ;;  %s216_s22 = scalar_lea.hbm %s353_s1, 256 }
   0x2   :  { %s20_s19 = sshll.u32 %s264_s18, 4  ;;  %p217_p0 = scmp.ne.s32.totalorder %s353_s1, %s216_s22  ;;  %s21_s19 = int_to_ptr.vmem [resolvable:$true] %s20_s19 }
   0x3   :  { %p220_p1 = scmp.lt.u32.totalorder %s216_s22, %s353_s1 }
   0x5   :  { %p222_p2 = pnand %p220_p1, %p217_p0 }
   0x7   :  { %225 = shalt.err (!%p222_p2)
}
   0x8   :  { %s226_s27 = scalar_lea.vmem %s21_s19, 256  ;;  %p231_p4 = scmp.lt.s32.totalorder %s21_s19, %s21_s19 }
   0x9   :  { %p227_p3 = scmp.ne.s32.totalorder %s21_s19, %s226_s27  ;;  %p232_p5 = scmp.lt.s32.totalorder %s226_s27, %s226_s27 }
   0xb   :  { %p233_p6 = por %p232_p5, %p231_p4 }
   0xd   :  { %p234_p7 = pnand %p233_p6, %p227_p3 }
   0xf   :  { %237 = shalt.err (!%p234_p7)
}
  0x10   :  { %s265_s28 = smov 128   ;;  %s266_s29 = smov 8  }
  0x11   :  { %26 = dma.hbm_to_vmem [thread:$0]  %s353_s1, 256, %s21_s19, [#allocation4], %s265_s28, %s265_s28, %s266_s29  }
  0x12   :  { %260 = dma.done.wait [#allocation4], 256  }
  0x13   :  { %261 = vsyncadd [#allocation4], 4294967040  ;;  %v267_v0 = vmov 0   ;;  %vm54_vm0 = vcmask 261120   ;;  %v38_v1 = vld [vmem:[%s352_s0] sm:$0xff]  ;;  %v39_v2 = vld [vmem:[%s352_s0 + $0x8] sm:$0xff]  ;;  %v160_v31 = vstv %s356_s4 }
  0x14   :  { %210 = vset.pattern.permute.xlu0 %v267_v0  ;;  %211 = vset.pattern.permute.xlu1 %v267_v0  ;;  %v40_v3 = vld [vmem:[%s352_s0 + $0x10] sm:$0xff]  ;;  %v197_v4 = vpack.c.bf16 %v39_v2, %v38_v1  ;;  %v41_v5 = vld [vmem:[%s352_s0 + $0x18] sm:$0xff]  ;;  %v36_v6 = vld [vmem:[#allocation3] sm:$0xff]  ;;  %s268_s21 = smov [#allocation6]  }
  0x15   :  { %v201_v7 = vpack.c.bf16 %v41_v5, %v40_v3  ;;  %194 = vmatprep.mubr.msk.f32.mxu0 %vm54_vm0, %v36_v6  ;;  %v42_v8 = vld [vmem:[%s354_s2] sm:$0xff]  ;;  %v43_v10 = vld [vmem:[%s354_s2 + $0x8] sm:$0xff]  ;;  %s169_s22 = sshll.u32 %s268_s21, 4  ;;  %s170_s22 = int_to_ptr.vmem [resolvable:$true] %s169_s22 }
  0x16   :  { %v138_v9 = vld [vmem:[%s355_s3] sm:$0xff]  ;;  %198 = vmatprep.subr.bf16.mxu0 %v197_v4  ;;  %46 = vperm.xlu0 %210, %v42_v8   ;;  %v139_v11 = vld [vmem:[%s355_s3 + $0x8] sm:$0xff]  ;;  %s238_s23 = scalar_lea.vmem %s170_s22, 16  ;;  %s242_s24 = scalar_lea.vmem %s170_s22, 32 }
  0x17   :  { %200 = vmatpush3.bf16.msra.mxu0 %v197_v4  ;;  %142 = vperm.xlu1 %211, %v138_v9   ;;  %v37_v12 = vld [vmem:[#allocation3 + $0x8] sm:$0xff]  ;;  %p239_p8 = scmp.ne.s32.totalorder %s170_s22, %s238_s23  ;;  %p243_p9 = scmp.lt.s32.totalorder %s170_s22, %s170_s22 }
  0x18   :  { %202 = vmatprep.subr.bf16.mxu0 %v201_v7  ;;  %p244_p10 = scmp.lt.s32.totalorder %s242_s24, %s238_s23 }
  0x1a   :  { %51 = vperm.xlu0 %210, %v43_v10   ;;  %p245_p11 = por %p244_p10, %p243_p9 }
  0x1b   :  { %204 = vmatpush3.bf16.msra.mxu0 %v201_v7  ;;  %147 = vperm.xlu1 %211, %v139_v11  }
  0x1c   :  { %p246_p12 = pnand %p245_p11, %p239_p8 }
  0x1e   :  { %195 = vmatmul.mubr.msk.f32.vlgmr.msra.gmra.mrb[0].mxu0 %vm54_vm0, %v37_v12 }
  0x95   :  { %v47_v13 = vpop.permute.xlu0 %46 }
  0x96   :  { %v143_v19 = vpop.permute.xlu1 %142 }
  0x99   :  { %v52_v14 = vpop.permute.xlu0 %51 }
  0x9a   :  { %v148_v21 = vpop.permute.xlu1 %147 }
  0xf1   :  { %v196_v15 = vpop.f32.mrb[0].mxu0 }
  0xf2   :  { %v133_v16 = vadd.f32 %v196_v15, %v52_v14  ;;  %v127_v17 = vpop.f32.mrb[1].mxu0 }
  0xf3   :  { %v128_v18 = vadd.f32 %v127_v17, %v47_v13 }
  0xf4   :  { %212 = vtanh.f32 %v133_v16 }
  0xf5   :  { %214 = vtanh.f32 %v128_v18 }
  0xfe   :  { %v213_v20 = vpop.eup %212 }
  0xff   :  { %v215_v22 = vpop.eup %214  ;;  %v151_v23 = vmul.f32 %v213_v20, %v148_v21 }
 0x100   :  { %v150_v24 = vmul.f32 %v215_v22, %v143_v19 }
 0x102   :  { %v152_v25 = vadd.f32 %v151_v23, %v150_v24 }
 0x104   :  { %v153_v26 = vrot.slane %v152_v25, 4 }
 0x106   :  { %v154_v27 = vadd.f32 %v153_v26, %v152_v25 }
 0x108   :  { %v155_v28 = vrot.slane %v154_v27, 2 }
 0x10a   :  { %v156_v29 = vadd.f32 %v155_v28, %v154_v27 }
 0x10c   :  { %v157_v30 = vrot.slane %v156_v29, 1 }
 0x10e   :  { %v158_v32 = vadd.f32 %v157_v30, %v156_v29 }
 0x110   :  { %v161_v33 = vadd.f32 %v160_v31, %v158_v32 }
 0x112   :  { %162 = vst [vmem:[#allocation6] sm:$0x1] %v161_v33 }
 0x113   :  { %249 = shalt.err (!%p246_p12)
}
 0x114   :  { %s250_s27 = scalar_lea.hbm %s357_s5, 16 }
 0x115   :  { %p251_p13 = scmp.ne.s32.totalorder %s357_s5, %s250_s27  ;;  %p254_p0 = scmp.lt.u32.totalorder %s250_s27, %s357_s5 }
 0x117   :  { %p256_p1 = pnand %p254_p0, %p251_p13 }
 0x119   :  { %259 = shalt.err (!%p256_p1)
}
 0x11a   :  { %172 = dma.vmem_to_hbm [thread:$0]  %s170_s22, 16, %s357_s5, [#allocation5]  }
 0x11b   :  { %262 = dma.done.wait [#allocation5], 16  }
 0x11c   :  { %263 = vsyncadd [#allocation5], 4294967280 }
 0x11d   :  { %176 = vsyncpa [#allocation4], 1 }
 0x11e   :  { %177 = vsyncpa [#allocation5], 1 }

</bundles_post_ra>
